<compile_context>
chip_gen: v5e
topology: v5e:2x2
jax: 0.10.0
libtpu: 0.0.40
codegen_flags: <defaults>
</compile_context>

<pallas_src>
import functools
import math

import jax
import jax.numpy as jnp
from jax import lax
from jax.experimental import pallas as pl
from jax.experimental.pallas import tpu as pltpu


# ---------------------------------------------------------------------------
# Pallas kernel: out = emb * sqrt(dim) + pe   (one (TS, Dp) tile per grid step)
# ---------------------------------------------------------------------------
def pe_kernel(emb_ref, pe_ref, o_ref, *, scale):
    # emb_ref / o_ref: (TS, Dp) tile of one batch element (batch dim squeezed).
    # pe_ref:          (TS, Dp) tile (table path) or (1, Dp) row (decode path);
    #                  the add broadcasts over sublanes in the decode case.
    x = emb_ref[...].astype(jnp.float32) * scale + pe_ref[...].astype(jnp.float32)
    o_ref[...] = x.astype(o_ref.dtype)


# ---------------------------------------------------------------------------
# pe buffer, identical to the PyTorch __init__ construction
# ---------------------------------------------------------------------------
def build_pe_table(max_len, dim):
    assert dim % 2 == 0, "dim must be even (matches the PyTorch module)"
    position = jnp.arange(max_len, dtype=jnp.float32)[:, None]          # [L, 1]
    div_term = jnp.exp(
        jnp.arange(0, dim, 2, dtype=jnp.float32) * -(math.log(10000.0) / dim)
    )                                                                   # [dim/2]
    angles = position * div_term                                        # [L, dim/2]
    pe = jnp.zeros((max_len, dim), dtype=jnp.float32)
    pe = pe.at[:, 0::2].set(jnp.sin(angles))
    pe = pe.at[:, 1::2].set(jnp.cos(angles))
    return pe                                                           # [L, dim]


def _round_up(x, m):
    return ((x + m - 1) // m) * m


# ---------------------------------------------------------------------------
# Wrapper: tile over (seq, batch), big lane-dense blocks, no copies if aligned
# ---------------------------------------------------------------------------
def positional_encoding_forward(emb, pe, *, dim, step=None,
                                block_bytes=2 * 1024 * 1024):
    """emb: [B, S, D], pe: [max_len, D] f32. Returns [B, S, D] in emb.dtype."""
    B, S, D = emb.shape
    assert D == dim
    out_dtype = emb.dtype

    pad_d = (-D) % 128          # only pad when the last dim is not lane-aligned
    Dp = D + pad_d

    # Seq tile sized against a VMEM budget (~block_bytes per emb block),
    # forced to a multiple of 8, capped at the (rounded-up) sequence length.
    bytes_per_row = Dp * jnp.dtype(emb.dtype).itemsize
    TS = max(8, ((block_bytes // bytes_per_row) // 8) * 8)
    TS = min(TS, _round_up(S, 8))
    n_s = pl.cdiv(S, TS)        # ragged S -> partial last block, no padding

    emb_in = emb
    if pad_d:
        emb_in = jnp.pad(emb, ((0, 0), (0, 0), (0, pad_d)))

    if step:  # matches PyTorch `if step:` (step=None or 0 -> table path)
        pe_in = lax.dynamic_slice_in_dim(pe, step, 1, axis=0)          # (1, D)
        if pad_d:
            pe_in = jnp.pad(pe_in, ((0, 0), (0, pad_d)))
        # Single row, constant index_map -> fetched once, resident in VMEM.
        pe_spec = pl.BlockSpec((1, Dp), lambda s, b: (0, 0))
    else:
        if pad_d:
            pe_in = jnp.pad(pe[:S], ((0, 0), (0, pad_d)))
        else:
            pe_in = pe          # full buffer; index_map picks the rows directly
        # Same block index for every batch step (batch is the innermost grid
        # axis) -> Pallas skips the re-DMA; pe streamed once per seq tile.
        pe_spec = pl.BlockSpec((TS, Dp), lambda s, b: (s, 0))

    out = pl.pallas_call(
        functools.partial(pe_kernel, scale=math.sqrt(dim)),
        out_shape=jax.ShapeDtypeStruct((B, S, Dp), out_dtype),
        grid_spec=pltpu.PrefetchScalarGridSpec(
            num_scalar_prefetch=0,
            grid=(n_s, B),      # seq tiles leading (megacore), batch innermost
            in_specs=[
                pl.BlockSpec((None, TS, Dp), lambda s, b: (b, s, 0)),
                pe_spec,
            ],
            out_specs=pl.BlockSpec((None, TS, Dp), lambda s, b: (b, s, 0)),
        ),
        compiler_params=pltpu.CompilerParams(
            dimension_semantics=("parallel", "parallel"),
            vmem_limit_bytes=32 * 1024 * 1024,
        ),
    )(emb_in, pe_in)

    if pad_d:
        out = out[:, :, :D]
    return out


if __name__ == "__main__":
    key = jax.random.PRNGKey(0)

    batch, seq, dim = 2, 64, 256      # dim lane-dense (multiple of 128)
    max_len = 512

    emb = jax.random.normal(key, (batch, seq, dim), dtype=jnp.float32)
    pe = build_pe_table(max_len, dim)

    # Table path (step=None): add pe[:seq].
    out = positional_encoding_forward(emb, pe, dim=dim, step=None)
    out = jax.block_until_ready(out)

    ref = emb * math.sqrt(dim) + pe[:seq][None, :, :]
    assert out.shape == (batch, seq, dim)
    assert out.dtype == emb.dtype
    assert bool(jnp.all(jnp.isfinite(out)))
    assert bool(jnp.allclose(out, ref, atol=1e-5, rtol=1e-5))

    # Decode path (step given): add pe[step] broadcast over seq.
    out_step = positional_encoding_forward(emb, pe, dim=dim, step=7)
    out_step = jax.block_until_ready(out_step)

    ref_step = emb * math.sqrt(dim) + pe[7][None, None, :]
    assert bool(jnp.allclose(out_step, ref_step, atol=1e-5, rtol=1e-5))

    print("KERNEL_OK")
</pallas_src>

<mosaic_0001>
module attributes {stable_mosaic.version = 11 : i64} {
  func.func @pe_kernel(%arg0: i32, %arg1: i32, %arg2: memref<1x64x256xf32, #tpu.memory_space<vmem>>, %arg3: memref<64x256xf32, #tpu.memory_space<vmem>>, %arg4: memref<1x64x256xf32, #tpu.memory_space<vmem>>) attributes {dimension_semantics = [#tpu.dimension_semantics<parallel>, #tpu.dimension_semantics<parallel>], iteration_bounds = array<i64: 1, 2>, scalar_prefetch = 0 : i64, scratch_operands = 0 : i64, tpu.core_type = #tpu.core_type<tc>, window_params = [{transform_indices = @transform_0, window_bounds = array<i64: 1, 64, 256>}, {transform_indices = @transform_1, window_bounds = array<i64: 64, 256>}, {transform_indices = @transform_2, window_bounds = array<i64: 1, 64, 256>}]} {
    %c0 = arith.constant 0 : index
    %c0_0 = arith.constant 0 : index
    %c0_1 = arith.constant 0 : index
    %0 = vector.load %arg2[%c0, %c0_0, %c0_1] : memref<1x64x256xf32, #tpu.memory_space<vmem>>, vector<1x64x256xf32>
    %1 = vector.shape_cast %0 : vector<1x64x256xf32> to vector<64x256xf32>
    %cst = arith.constant 1.600000e+01 : f32
    %2 = vector.broadcast %cst : f32 to vector<64x256xf32>
    %3 = arith.mulf %1, %2 : vector<64x256xf32>
    %c0_2 = arith.constant 0 : index
    %c0_3 = arith.constant 0 : index
    %4 = vector.load %arg3[%c0_2, %c0_3] : memref<64x256xf32, #tpu.memory_space<vmem>>, vector<64x256xf32>
    %5 = arith.addf %3, %4 : vector<64x256xf32>
    %c0_4 = arith.constant 0 : index
    %c0_5 = arith.constant 0 : index
    %c0_6 = arith.constant 0 : index
    %6 = vector.load %arg4[%c0_4, %c0_5, %c0_6] : memref<1x64x256xf32, #tpu.memory_space<vmem>>, vector<1x64x256xf32>
    %7 = vector.shape_cast %6 : vector<1x64x256xf32> to vector<64x256xf32>
    %8 = vector.shape_cast %5 : vector<64x256xf32> to vector<1x64x256xf32>
    tpu.vector_store %arg4[%c0_4, %c0_5, %c0_6], %8 {strides = array<i32>} : memref<1x64x256xf32, #tpu.memory_space<vmem>>, vector<1x64x256xf32>,
    return
  }
  func.func @transform_0(%arg0: i32, %arg1: i32) -> (i32, i32, i32) {
    %c0_i32 = arith.constant 0 : i32
    %c0_i32_0 = arith.constant 0 : i32
    return %arg1, %arg0, %c0_i32 : i32, i32, i32
  }
  func.func @transform_1(%arg0: i32, %arg1: i32) -> (i32, i32) {
    %c0_i32 = arith.constant 0 : i32
    %c0_i32_0 = arith.constant 0 : i32
    return %arg0, %c0_i32 : i32, i32
  }
  func.func @transform_2(%arg0: i32, %arg1: i32) -> (i32, i32, i32) {
    %c0_i32 = arith.constant 0 : i32
    %c0_i32_0 = arith.constant 0 : i32
    return %arg1, %arg0, %c0_i32 : i32, i32, i32
  }
}

</mosaic_0001>

<bundles_post_ra>
// kernel: tpu_custom_call.1
= control target key start
LH: loop header
LB: loop body
LE: loop exit
PB: predicated region body
PF: predicated region fallthrough
CT: control target
= control target key end

     0   :  { %7 = vsyncpa [#allocation3], 0  ;;  %s870_s0 = inlined_call_operand.hbm [shape: f32[2,64,256], index: 0, kind: input, shape index: {}]   ;;  %s871_s1 = inlined_call_operand.hbm [shape: f32[512,256], index: 1, kind: input, shape index: {}]   ;;  %s872_s2 = inlined_call_operand.hbm [shape: f32[2,64,256], index: 2, kind: output, shape index: {}]  }
   0x1   :  { %9 = vsyncpa [#allocation3 + $0x1], 0 }
   0x2   :  { %10 = vsyncpa [#allocation6], 0 }
   0x3   :  { %11 = vsyncpa [#allocation4], 0 }
   0x4   :  { %13 = vsyncpa [#allocation4 + $0x1], 0  ;;  %s674_s9 = smov 0   ;;  %s676_s10 = smov 0  }
   0x5   :  { %s678_s11 = smov 0   ;;  %s680_s12 = smov 0  }
   0x6   :  { %s682_s13 = smov 0   ;;  %s684_s14 = smov 0  }
   0x7 LB: > { %s410_s15 = sadd.s32 4294967295, %s652_s14   ;;  %s411_s16 = sadd.s32 4294967294, %s652_s14   ;;  %s652_s14 = sphi %s684_s14, %s19_s14   ;;  %s648_s13 = sphi %s682_s13, %s884_s13   ;;  %s644_s12 = sphi %s680_s12, %s883_s12   ;;  %s640_s11 = sphi %s678_s11, %s882_s11   ;;  %s636_s10 = sphi %s676_s10, %s881_s10   ;;  %s632_s9 = sphi %s674_s9, %s880_s9  }
   0x8   : > { %p53_p0 = scmp.ne.s32.totalorder %s636_s10, %s632_s9  ;;  %p708_p1 = scmp.eq.s32.totalorder %s410_s15, 0 }
   0x9   : > { %p712_p2 = scmp.eq.s32.totalorder %s410_s15, 1  ;;  %p111_p3 = scmp.eq.s32.totalorder %s411_s16, 1 }
   0xa   : > { %p718_p4 = por %p708_p1, %p53_p0  ;;  %p412_p5 = scmp.ge.s32.totalorder %s652_s14, 1 }
   0xb   : > { %p723_p6 = por %p111_p3, %p53_p0  ;;  %p118_p7 = scmp.lt.s32.totalorder %s652_s14, 3 }
   0xc   : > { %s133_s23 = sshll.u32 %s871_s1, 4  ;;  %s654_s25 = smov [#allocation5]   ;;  %s134_s23 = int_to_ptr.hbm [resolvable:$true] %s133_s23 }
   0xd   : > { %p731_p8 = pnand %p412_p5, %p118_p7  ;;  %s135_s26 = sshll.u32 %s654_s25, 4  ;;  %s136_s26 = int_to_ptr.vmem [resolvable:$true] %s135_s26 }
   0xe   : > { %p414_p11 = scmp.ge.s32.totalorder %s652_s14, 2  ;;  %s655_s27 = smov 256  }
   0xf   : > { %p437_p9 = pneg %p731_p8  ;;  %s656_s28 = smov 16  }
  0x10   : > { %s28_s29 = sadd.s32 1, %s648_s13  ;;  %s40_s30 = sadd.s32 1, %s640_s11 }
  0x11   : > { %p438_p10 = pnand %p437_p9, %p708_p1  ;;  %p29_p12 = scmp.ge.s32.totalorder %s28_s29, 2 }
  0x12   : > { %p47_p13 = scmp.ne.s32.totalorder %s640_s11, %s636_s10  ;;  %p48_p0 = scmp.eq.s32.totalorder %s652_s14, 0 }
  0x13   : > { %440 = dma.hbm_to_vmem [thread:$0]  (!%p438_p10), %s134_s23, 2048, %s136_s26, [#allocation6], %s655_s27, %s655_s27, %s656_s28  }
  0x14   : > { %s886_s29 = smov (%p29_p12, %s28_s29), 0  ;;  %p750_p3 = por %p48_p0, %p47_p13 }
  0x15   : > { %p756_p5 = por %p712_p2, %p47_p13  ;;  %s35_s5 = ssub.s32 %s648_s13, %s886_s29 }
  0x16   : > { %p450_p7 = scmp.lt.s32.totalorder %s652_s14, 2  ;;  %p38_p9 = scmp.eq.s32.totalorder %s35_s5, 0 }
  0x17   : > { %s149_s6 = sand.u32 1, %s640_s11   ;;  %s427_s15 = sshll.u32 %s648_s13, 7 }
  0x18   : > { %s415_s7 = sshll.u32 %s149_s6, 7  ;;  %s161_s22 = scalar_lea.hbm %s870_s0, %s427_s15 }
  0x19   : > { %s765_s8 = scalar_select %p38_p9, %s640_s11, %s40_s30  }
  0x1a   : > { %s153_s23 = scalar_lea.vmem [#allocation2], %s415_s7  ;;  %s162_s18 = sshll.u32 %s161_s22, 4  ;;  %s163_s18 = int_to_ptr.hbm [resolvable:$true] %s162_s18 }
  0x1b   : > { %s164_s25 = sshll.u32 %s153_s23, 4  ;;  %p442_p2 = pnand %p450_p7, %p750_p3  ;;  %s165_s25 = int_to_ptr.vmem [resolvable:$true] %s164_s25 }
  0x1c   : > { %s150_s26 = scalar_lea.sflag [#allocation3], %s149_s6  ;;  %176 = sbr.rel (%p731_p8) target bundleno = 60 (0x3c), region = 28 }
  0x1d   : > { %444 = dma.hbm_to_vmem [thread:$0]  (!%p442_p2), %s163_s18, 2048, %s165_s25, %s150_s26, %s655_s27, %s655_s27, %s656_s28  }
  0x1e   : > { %s779_s30 = sand.u32 (!%p731_p8), 1, %s636_s10  }
  0x1f   : > { %s419_s5 = sshll.u32 (!%p731_p8), %s779_s30, 7  ;;  %s179_s7 = scalar_lea.sflag (!%p731_p8), [#allocation3], %s779_s30 }
  0x20   : > { %s785_s3 = scalar_lea.vmem (!%p731_p8), [#allocation2], %s419_s5 }
  0x21   : > { %619 = dma.done.wait (%p718_p4), %s179_s7, 2048  }
  0x22   : > { %621 = vsyncadd (%p718_p4), %s179_s7, 4294965248 }
  0x23   : > { %623 = dma.done.wait (%p708_p1), [#allocation6], 2048  }
  0x24   : > { %625 = vsyncadd (%p708_p1), [#allocation6], 4294965248  ;;  %v212_v0 = vld [vmem:[%s785_s3] sm:$0xff]  ;;  %v213_v2 = vld [vmem:[%s785_s3 + $0x8] sm:$0xff]  ;;  %s805_s17 = scalar_lea.vmem [#allocation7], %s419_s5  ;;  %s428_s19 = sshll.u32 %s644_s12, 7 }
  0x25   : > { %v244_v1 = vld [vmem:[#allocation5] sm:$0xff]  ;;  %v228_v3 = vmul.f32 16.0, %v212_v0  ;;  %v229_v4 = vmul.f32 16.0, %v213_v2  ;;  %v245_v5 = vld [vmem:[#allocation5 + $0x8] sm:$0xff]  ;;  %v214_v6 = vld [vmem:[%s785_s3 + $0x10] sm:$0xff]  ;;  %s307_s27 = scalar_lea.hbm %s872_s2, %s428_s19  ;;  %s308_s28 = sshll.u32 %s805_s17, 4  ;;  %s309_s28 = int_to_ptr.vmem [resolvable:$true] %s308_s28 }
  0x26   : > { %v246_v7 = vld [vmem:[#allocation5 + $0x10] sm:$0xff]  ;;  %v230_v8 = vmul.f32 16.0, %v214_v6  ;;  %v215_v9 = vld [vmem:[%s785_s3 + $0x18] sm:$0xff]  ;;  %v216_v11 = vld [vmem:[%s785_s3 + $0x20] sm:$0xff]  ;;  %s310_s6 = sshll.u32 %s307_s27, 4  ;;  %s293_s15 = scalar_lea.sflag [#allocation4], %s779_s30  ;;  %s311_s6 = int_to_ptr.hbm [resolvable:$true] %s310_s6 }
  0x27   : > { %v247_v10 = vld [vmem:[#allocation5 + $0x18] sm:$0xff]  ;;  %v260_v12 = vadd.f32 %v244_v1, %v228_v3  ;;  %v261_v13 = vadd.f32 %v245_v5, %v229_v4  ;;  %v231_v14 = vmul.f32 16.0, %v215_v9  ;;  %v232_v15 = vmul.f32 16.0, %v216_v11  ;;  %v248_v16 = vld [vmem:[#allocation5 + $0x20] sm:$0xff]  ;;  %v217_v17 = vld [vmem:[%s785_s3 + $0x28] sm:$0xff]  ;;  %s580_s16 = sshra.s32 %s311_s6, 4  ;;  %s581_s16 = int_to_ptr.hbm [resolvable:$true] %s580_s16 }
  0x28   : > { %v249_v18 = vld [vmem:[#allocation5 + $0x28] sm:$0xff]  ;;  %v262_v19 = vadd.f32 %v246_v7, %v230_v8  ;;  %v233_v20 = vmul.f32 16.0, %v217_v17  ;;  %v218_v21 = vld [vmem:[%s785_s3 + $0x30] sm:$0xff]  ;;  %v219_v23 = vld [vmem:[%s785_s3 + $0x38] sm:$0xff]  ;;  %s582_s21 = scalar_lea.hbm %s581_s16, 128  ;;  %s586_s25 = scalar_lea.hbm %s872_s2, 256 }
  0x29   : > { %v250_v22 = vld [vmem:[#allocation5 + $0x30] sm:$0xff]  ;;  %276 = vst [vmem:[%s805_s17] sm:$0xff] %v260_v12  ;;  %v263_v24 = vadd.f32 %v247_v10, %v231_v14  ;;  %v264_v25 = vadd.f32 %v248_v16, %v232_v15  ;;  %v234_v26 = vmul.f32 16.0, %v218_v21  ;;  %v235_v27 = vmul.f32 16.0, %v219_v23  ;;  %v251_v28 = vld [vmem:[#allocation5 + $0x38] sm:$0xff]  ;;  %v220_v29 = vld [vmem:[%s785_s3 + $0x40] sm:$0xff]  ;;  %p583_p1 = scmp.ne.s32.totalorder %s581_s16, %s582_s21  ;;  %p587_p10 = scmp.lt.s32.totalorder %s581_s16, %s872_s2 }
  0x2a   : > { %277 = vst [vmem:[%s805_s17 + $0x8] sm:$0xff] %v261_v13  ;;  %v265_v30 = vadd.f32 %v249_v18, %v233_v20  ;;  %v236_v31 = vmul.f32 16.0, %v220_v29  ;;  %v252_v32 = vld [vmem:[#allocation5 + $0x40] sm:$0xff]  ;;  %v221_v33 = vld [vmem:[%s785_s3 + $0x48] sm:$0xff]  ;;  %v222_v34 = vld [vmem:[%s785_s3 + $0x50] sm:$0xff]  ;;  %p588_p12 = scmp.lt.s32.totalorder %s586_s25, %s582_s21 }
  0x2b   : > { %278 = vst [vmem:[%s805_s17 + $0x10] sm:$0xff] %v262_v19  ;;  %v266_v35 = vadd.f32 %v250_v22, %v234_v26  ;;  %v237_v36 = vmul.f32 16.0, %v221_v33  ;;  %v253_v37 = vld [vmem:[#allocation5 + $0x48] sm:$0xff]  ;;  %v238_v38 = vmul.f32 16.0, %v222_v34  ;;  %v223_v39 = vld [vmem:[%s785_s3 + $0x58] sm:$0xff]  ;;  %v267_v40 = vadd.f32 %v251_v28, %v235_v27  ;;  %v254_v41 = vld [vmem:[#allocation5 + $0x50] sm:$0xff]  ;;  %p584_p4 = pnand %p583_p1, %p756_p5 }
  0x2c   : > { %279 = vst [vmem:[%s805_s17 + $0x18] sm:$0xff] %v263_v24  ;;  %v239_v42 = vmul.f32 16.0, %v223_v39  ;;  %v224_v43 = vld [vmem:[%s785_s3 + $0x60] sm:$0xff]  ;;  %v225_v44 = vld [vmem:[%s785_s3 + $0x68] sm:$0xff]  ;;  %v268_v45 = vadd.f32 %v252_v32, %v236_v31  ;;  %v255_v46 = vld [vmem:[#allocation5 + $0x58] sm:$0xff]  ;;  %p589_p13 = por %p588_p12, %p587_p10 }
  0x2d   : > { %280 = vst [vmem:[%s805_s17 + $0x20] sm:$0xff] %v264_v25  ;;  %v240_v47 = vmul.f32 16.0, %v224_v43  ;;  %v226_v48 = vld [vmem:[%s785_s3 + $0x70] sm:$0xff]  ;;  %v269_v49 = vadd.f32 %v253_v37, %v237_v36  ;;  %v256_v50 = vld [vmem:[#allocation5 + $0x60] sm:$0xff]  ;;  %v241_v51 = vmul.f32 16.0, %v225_v44  ;;  %v227_v52 = vld [vmem:[%s785_s3 + $0x78] sm:$0xff]  ;;  %v270_v53 = vadd.f32 %v254_v41, %v238_v38  ;;  %p585_p8 = pneg %p584_p4 }
  0x2e   : > { %281 = vst [vmem:[%s805_s17 + $0x28] sm:$0xff] %v265_v30  ;;  %v257_v54 = vld [vmem:[#allocation5 + $0x68] sm:$0xff]  ;;  %v242_v55 = vmul.f32 16.0, %v226_v48  ;;  %v271_v56 = vadd.f32 %v255_v46, %v239_v42  ;;  %v258_v57 = vld [vmem:[#allocation5 + $0x70] sm:$0xff]  ;;  %v243_v58 = vmul.f32 16.0, %v227_v52  ;;  %v259_v60 = vld [vmem:[#allocation5 + $0x78] sm:$0xff] }
  0x2f   : > { %282 = vst [vmem:[%s805_s17 + $0x30] sm:$0xff] %v266_v35  ;;  %v272_v59 = vadd.f32 %v256_v50, %v240_v47  ;;  %v273_v61 = vadd.f32 %v257_v54, %v241_v51  ;;  %p590_p0 = pnand %p589_p13, %p585_p8 }
  0x30   : > { %283 = vst [vmem:[%s805_s17 + $0x38] sm:$0xff] %v267_v40  ;;  %v274_v62 = vadd.f32 %v258_v57, %v242_v55  ;;  %v275_v63 = vadd.f32 %v259_v60, %v243_v58 }
  0x31   : > { %284 = vst [vmem:[%s805_s17 + $0x40] sm:$0xff] %v268_v45 }
  0x32   : > { %285 = vst [vmem:[%s805_s17 + $0x48] sm:$0xff] %v269_v49 }
  0x33   : > { %286 = vst [vmem:[%s805_s17 + $0x50] sm:$0xff] %v270_v53 }
  0x34   : > { %287 = vst [vmem:[%s805_s17 + $0x58] sm:$0xff] %v271_v56 }
  0x35   : > { %288 = vst [vmem:[%s805_s17 + $0x60] sm:$0xff] %v272_v59 }
  0x36   : > { %289 = vst [vmem:[%s805_s17 + $0x68] sm:$0xff] %v273_v61 }
  0x37   : > { %290 = vst [vmem:[%s805_s17 + $0x70] sm:$0xff] %v274_v62 }
  0x38   : > { %291 = vst [vmem:[%s805_s17 + $0x78] sm:$0xff] %v275_v63 }
  0x39   : > { %593 = shalt.err (!%p590_p0)
}
  0x3a   : > { %s657_s30 = smov 256   ;;  %s658_s5 = smov 16  }
  0x3b   : > { %435 = dma.vmem_to_hbm [thread:$0]  (%p756_p5), %s309_s28, 2048, %s311_s6, %s293_s15, %s657_s30, %s657_s30, %s658_s5  }
  0x3c PF: > { %s325_s7 = sand.u32 1, %s632_s9   ;;  %p446_p3 = pnand %p414_p11, %p723_p6 }
  0x3d   : > { %s326_s3 = scalar_lea.sflag [#allocation4], %s325_s7 }
  0x3e   : > { %p447_p7 = pneg %p446_p3 }
  0x40   : > { %627 = dma.done.wait (%p447_p7), %s326_s3, 2048  }
  0x41   : > { %629 = vsyncadd (%p447_p7), %s326_s3, 4294965248  ;;  %s19_s14 = sadd.s32 1, %s652_s14   ;;  %s880_s9 = smov %s636_s10 }
  0x42   : > { %p16_p9 = scmp.ge.s32.totalorder %s19_s14, 4   ;;  %s881_s10 = smov %s640_s11 }
  0x43   : > { %s882_s11 = smov %s765_s8  ;;  %s883_s12 = smov %s648_s13 }
  0x44   : > { %s884_s13 = smov %s886_s29  ;;  %18 = sbr.rel (!%p16_p9) target bundleno = 7 (0x7), region = 78 }
  0x49   :  { %332 = vsyncpa [#allocation3], 1 }
  0x4a   :  { %334 = vsyncpa [#allocation3 + $0x1], 1 }
  0x4b   :  { %335 = vsyncpa [#allocation6], 1 }
  0x4c   :  { %336 = vsyncpa [#allocation4], 1 }
  0x4d   :  { %338 = vsyncpa [#allocation4 + $0x1], 1 }

</bundles_post_ra>
